<compile_context>
chip_gen: v5e
topology: v5e:2x2
jax: 0.10.0
libtpu: 0.0.40
codegen_flags: <defaults>
</compile_context>

<pallas_src>
import jax
import jax.numpy as jnp
from jax import lax
from jax.experimental import pallas as pl
from jax.experimental.pallas import tpu as pltpu


def _round_up(x, m):
    return (x + m - 1) // m * m


def make_dense_block_kernel(*, num_convs, ks, p, eps, c_in, growth, c_cap,
                            length, nl, w_pad):
    """Builds the Pallas kernel body (all config is static / closed over)."""

    def kernel(x_ref, gamma_ref, beta_ref, w_ref, b_ref, out_ref, col_ref):
        # ---- 0. one-time zero init (pad columns / not-yet-written rows) ------
        out_ref[...] = jnp.zeros(out_ref.shape, out_ref.dtype)
        col_ref[...] = jnp.zeros(col_ref.shape, col_ref.dtype)

        # ---- 1. BatchNorm1d, training-mode batch stats (biased variance) -----
        x = x_ref[...]                                   # (c_in, nl) f32
        inv_count = 1.0 / float(nl)
        mean = jnp.sum(x, axis=1, keepdims=True) * inv_count
        diff = x - mean
        var = jnp.sum(diff * diff, axis=1, keepdims=True) * inv_count
        inv_std = lax.rsqrt(var + eps)
        y_bn = gamma_ref[...] * (diff * inv_std) + beta_ref[...]
        out_ref[0:c_in, 0:nl] = y_bn                     # conv-0 input (not relu'd yet)

        # ---- tap-validity masks, hoisted out of the conv loop -----------------
        # Column j (= n*L + t) is valid for tap k (shift s = k - p) iff it is a
        # real data column (j < nl) and t + s stays inside [0, L) (zero padding).
        col_idx = lax.broadcasted_iota(jnp.int32, (1, w_pad), 1)
        t_idx = col_idx % length
        masks = []
        for k in range(ks):
            s = k - p
            masks.append((col_idx < nl) & (t_idx + s >= 0) & (t_idx + s < length))

        cdt = col_ref.dtype

        # ---- 2. dense block: one fused-tap MXU matmul per conv ----------------
        for i in range(num_convs):
            c_i = c_in + growth * i

            # Rebuild the im2col stack: one shifted + masked full-height copy of
            # the running feature buffer per tap (rows >= c_i are still zero, and
            # their weight columns are zero-padded, so they contribute nothing).
            feats = out_ref[...]                         # (c_cap, w_pad) f32
            for k in range(ks):
                shift = (p - k) % w_pad
                shifted = feats if shift == 0 else pltpu.roll(feats, shift=shift, axis=1)
                shifted = jnp.where(masks[k], shifted, 0.0)
                col_ref[k * c_cap:(k + 1) * c_cap, :] = shifted.astype(cdt)

            # Conv1d over all batches/taps as one (growth, ks*c_cap) x (ks*c_cap, w_pad) dot.
            acc = jnp.dot(w_ref[i], col_ref[...], preferred_element_type=jnp.float32)
            conv = jnp.maximum(acc + b_ref[i], 0.0)      # relu(conv1d(dense_in))
            out_ref[c_i:c_i + growth, :] = conv          # "concat" = in-place row write

            if i == 0:
                # The first cat+relu also rectifies the BN rows; all later ReLUs
                # are idempotent on the (already >= 0) running output.
                out_ref[0:c_in, :] = jnp.maximum(out_ref[0:c_in, :], 0.0)

    return kernel


def dense_block_forward(x, gamma, beta, weights, biases, *, ks, st, p, eps=1e-5,
                        compute_dtype=jnp.bfloat16):
    """Pallas wrapper. x: (N, C_in, L); weights[i]: (G, C_in + G*i, ks); biases[i]: (G,).

    compute_dtype: operand dtype for the MXU matmul (bf16 recommended on v5e/v6e);
    BN / bias / ReLU math and matmul accumulation stay in f32.
    """
    n, c_in, length = x.shape
    num_convs = len(weights)
    growth = weights[0].shape[0]
    c_total = c_in + growth * num_convs

    l_out = (length + 2 * p - ks) // st + 1
    if st != 1 or l_out != length:
        raise ValueError("DenseBlock needs length-preserving convs (st=1, ks=2p+1); "
                         f"got st={st}, ks={ks}, p={p}, L={length} -> L_out={l_out}")

    nl = n * length
    c_cap = _round_up(c_total, 8)             # sublane-pad channels (f32 tiling)
    w_pad = _round_up(max(nl, 128), 128)      # lane-dense working width

    # Wrapper-side layout plumbing: flatten (N, L) onto lanes, batch-major.
    x_flat = jnp.transpose(x, (1, 0, 2)).reshape(c_in, nl).astype(jnp.float32)
    gamma2 = gamma.reshape(c_in, 1).astype(jnp.float32)
    beta2 = beta.reshape(c_in, 1).astype(jnp.float32)

    # Pack all conv params into two arrays; per conv, the ks taps are flattened
    # into one (growth, ks*c_cap) matrix, zero-padded so unused im2col rows vanish.
    w_np = jnp.zeros((num_convs, growth, ks * c_cap), jnp.float32)
    for i, w in enumerate(weights):
        c_i = c_in + growth * i
        for k in range(ks):
            w_np = w_np.at[i, :, k * c_cap:k * c_cap + c_i].set(w[:, :, k])
    w_packed = w_np.astype(compute_dtype)
    b_packed = jnp.stack(biases).reshape(num_convs, growth, 1).astype(jnp.float32)

    kernel = make_dense_block_kernel(
        num_convs=num_convs, ks=ks, p=p, eps=eps, c_in=c_in, growth=growth,
        c_cap=c_cap, length=length, nl=nl, w_pad=w_pad)

    flops = 2 * num_convs * growth * (ks * c_cap) * w_pad + 8 * c_in * nl
    bytes_accessed = (int(x_flat.size) + int(gamma2.size) + int(beta2.size)
                      + int(b_packed.size)) * 4 \
        + int(w_packed.size) * jnp.dtype(compute_dtype).itemsize \
        + c_cap * w_pad * 4

    out_buf = pl.pallas_call(
        kernel,
        out_shape=jax.ShapeDtypeStruct((c_cap, w_pad), jnp.float32),
        in_specs=[pl.BlockSpec(memory_space=pltpu.MemorySpace.VMEM)] * 5,
        out_specs=pl.BlockSpec(memory_space=pltpu.MemorySpace.VMEM),
        scratch_shapes=[pltpu.VMEM((ks * c_cap, w_pad), compute_dtype)],
        compiler_params=pltpu.CompilerParams(vmem_limit_bytes=32 * 1024 * 1024),
        cost_estimate=pl.CostEstimate(flops=flops, transcendentals=c_in,
                                      bytes_accessed=bytes_accessed),
    )(x_flat, gamma2, beta2, w_packed, b_packed)

    # TODO(synk): for large N*L, add a ("parallel",) grid over length tiles (with a
    # p-column halo) plus a separate BN-stats pass so v7x's 2 TensorCores are used.

    out = out_buf[:c_total, :nl].reshape(c_total, n, length)
    return jnp.transpose(out, (1, 0, 2))


def dense_block_reference(x, gamma, beta, weights, biases, *, ks, st, p, eps=1e-5):
    """Pure-JAX reference mirroring the PyTorch forward (training-mode BN)."""
    mean = x.mean(axis=(0, 2), keepdims=True)
    var = ((x - mean) ** 2).mean(axis=(0, 2), keepdims=True)
    out = gamma.reshape(1, -1, 1) * (x - mean) / jnp.sqrt(var + eps) + beta.reshape(1, -1, 1)
    for w, b in zip(weights, biases):
        conv = lax.conv_general_dilated(
            out, w, window_strides=(st,), padding=[(p, p)],
            dimension_numbers=("NCH", "OIH", "NCH"))
        conv = jax.nn.relu(conv + b.reshape(1, -1, 1))
        out = jax.nn.relu(jnp.concatenate([out, conv], axis=1))
    return out


if __name__ == "__main__":
    # Module config: DenseBlock(in_channels=4, dense_out_channels=4, num_convs=3,
    #                           ks=3, st=1, p=1)  -- length-preserving convs.
    N, C_IN, L = 2, 4, 16
    GROWTH, NUM_CONVS, KS, ST, P = 4, 3, 3, 1, 1

    key = jax.random.PRNGKey(0)
    k_x, k_g, k_b, k_w = jax.random.split(key, 4)

    x = jax.random.normal(k_x, (N, C_IN, L), dtype=jnp.float32)
    gamma = jax.random.uniform(k_g, (C_IN,), minval=0.5, maxval=1.5, dtype=jnp.float32)
    beta = 0.1 * jax.random.normal(k_b, (C_IN,), dtype=jnp.float32)

    weights, biases = [], []
    wkeys = jax.random.split(k_w, NUM_CONVS * 2)
    for i in range(NUM_CONVS):
        c_i = C_IN + GROWTH * i
        weights.append(0.2 * jax.random.normal(wkeys[2 * i], (GROWTH, c_i, KS),
                                               dtype=jnp.float32))
        biases.append(0.1 * jax.random.normal(wkeys[2 * i + 1], (GROWTH,),
                                              dtype=jnp.float32))

    ref = dense_block_reference(x, gamma, beta, weights, biases, ks=KS, st=ST, p=P)

    # f32-operand path: strict algorithmic check against the pure-JAX reference.
    out_f32 = jax.block_until_ready(
        dense_block_forward(x, gamma, beta, weights, biases, ks=KS, st=ST, p=P,
                            compute_dtype=jnp.float32))
    assert out_f32.shape == (N, C_IN + GROWTH * NUM_CONVS, L), out_f32.shape
    assert jnp.allclose(out_f32, ref, rtol=1e-4, atol=1e-4), \
        f"f32 path max abs err = {jnp.max(jnp.abs(out_f32 - ref))}"

    # bf16-operand path (default perf path for v5e/v6e MXU): looser tolerance for
    # bf16 operand rounding; accumulation and elementwise math are still f32.
    out_bf16 = jax.block_until_ready(
        dense_block_forward(x, gamma, beta, weights, biases, ks=KS, st=ST, p=P))
    assert out_bf16.shape == (N, C_IN + GROWTH * NUM_CONVS, L), out_bf16.shape
    assert jnp.allclose(out_bf16, ref, rtol=5e-2, atol=5e-2), \
        f"bf16 path max abs err = {jnp.max(jnp.abs(out_bf16 - ref))}"

    print("KERNEL_OK")
</pallas_src>

<mosaic_0001>
module attributes {stable_mosaic.version = 11 : i64} {
  func.func @kernel(%arg0: memref<4x32xf32, #tpu.memory_space<vmem>>, %arg1: memref<4x1xf32, #tpu.memory_space<vmem>>, %arg2: memref<4x1xf32, #tpu.memory_space<vmem>>, %arg3: memref<3x4x48xf32, #tpu.memory_space<vmem>>, %arg4: memref<3x4x1xf32, #tpu.memory_space<vmem>>, %arg5: memref<16x128xf32, #tpu.memory_space<vmem>>, %arg6: memref<48x128xf32, #tpu.memory_space<vmem>>) attributes {dimension_semantics = [], scalar_prefetch = 0 : i64, scratch_operands = 1 : i64, tpu.core_type = #tpu.core_type<tc>} {
    %cst = arith.constant 0.000000e+00 : f32
    %0 = vector.broadcast %cst : f32 to vector<16x128xf32>
    %c0 = arith.constant 0 : index
    %c0_0 = arith.constant 0 : index
    %1 = vector.load %arg5[%c0, %c0_0] : memref<16x128xf32, #tpu.memory_space<vmem>>, vector<16x128xf32>
    tpu.vector_store %arg5[%c0, %c0_0], %0 {strides = array<i32>} : memref<16x128xf32, #tpu.memory_space<vmem>>, vector<16x128xf32>,
    %cst_1 = arith.constant 0.000000e+00 : f32
    %2 = vector.broadcast %cst_1 : f32 to vector<48x128xf32>
    %c0_2 = arith.constant 0 : index
    %c0_3 = arith.constant 0 : index
    %3 = vector.load %arg6[%c0_2, %c0_3] : memref<48x128xf32, #tpu.memory_space<vmem>>, vector<48x128xf32>
    tpu.vector_store %arg6[%c0_2, %c0_3], %2 {strides = array<i32>} : memref<48x128xf32, #tpu.memory_space<vmem>>, vector<48x128xf32>,
    %c0_4 = arith.constant 0 : index
    %c0_5 = arith.constant 0 : index
    %4 = vector.load %arg0[%c0_4, %c0_5] : memref<4x32xf32, #tpu.memory_space<vmem>>, vector<4x32xf32>
    %cst_6 = arith.constant dense<0.000000e+00> : vector<4xf32>
    %5 = vector.multi_reduction <add>, %4, %cst_6 [1] : vector<4x32xf32> to vector<4xf32>
    %6 = vector.shape_cast %5 : vector<4xf32> to vector<4x1xf32>
    %cst_7 = arith.constant 3.125000e-02 : f32
    %7 = vector.broadcast %cst_7 : f32 to vector<4x1xf32>
    %8 = arith.mulf %6, %7 : vector<4x1xf32>
    %9 = vector.broadcast %8 : vector<4x1xf32> to vector<4x32xf32>
    %10 = arith.subf %4, %9 : vector<4x32xf32>
    %11 = arith.mulf %10, %10 : vector<4x32xf32>
    %cst_8 = arith.constant dense<0.000000e+00> : vector<4xf32>
    %12 = vector.multi_reduction <add>, %11, %cst_8 [1] : vector<4x32xf32> to vector<4xf32>
    %13 = vector.shape_cast %12 : vector<4xf32> to vector<4x1xf32>
    %cst_9 = arith.constant 3.125000e-02 : f32
    %14 = vector.broadcast %cst_9 : f32 to vector<4x1xf32>
    %15 = arith.mulf %13, %14 : vector<4x1xf32>
    %cst_10 = arith.constant 9.99999974E-6 : f32
    %16 = vector.broadcast %cst_10 : f32 to vector<4x1xf32>
    %17 = arith.addf %15, %16 : vector<4x1xf32>
    %18 = math.rsqrt %17 : vector<4x1xf32>
    %c0_11 = arith.constant 0 : index
    %c0_12 = arith.constant 0 : index
    %19 = vector.load %arg1[%c0_11, %c0_12] : memref<4x1xf32, #tpu.memory_space<vmem>>, vector<4x1xf32>
    %20 = vector.broadcast %18 : vector<4x1xf32> to vector<4x32xf32>
    %21 = arith.mulf %10, %20 : vector<4x32xf32>
    %22 = vector.broadcast %19 : vector<4x1xf32> to vector<4x32xf32>
    %23 = arith.mulf %22, %21 : vector<4x32xf32>
    %c0_13 = arith.constant 0 : index
    %c0_14 = arith.constant 0 : index
    %24 = vector.load %arg2[%c0_13, %c0_14] : memref<4x1xf32, #tpu.memory_space<vmem>>, vector<4x1xf32>
    %25 = vector.broadcast %24 : vector<4x1xf32> to vector<4x32xf32>
    %26 = arith.addf %23, %25 : vector<4x32xf32>
    %c0_15 = arith.constant 0 : index
    %c0_16 = arith.constant 0 : index
    %27 = vector.load %arg5[%c0_15, %c0_16] : memref<16x128xf32, #tpu.memory_space<vmem>>, vector<4x32xf32>
    tpu.vector_store %arg5[%c0_15, %c0_16], %26 {strides = array<i32>} : memref<16x128xf32, #tpu.memory_space<vmem>>, vector<4x32xf32>,
    %28 = tpu.iota {dimensions = array<i32: 1>} : vector<1x128xi32>
    %c16_i32 = arith.constant 16 : i32
    %c0_i32 = arith.constant 0 : i32
    %29 = arith.cmpi eq, %c16_i32, %c0_i32 : i32
    %c1_i32 = arith.constant 1 : i32
    %30 = arith.select %29, %c1_i32, %c16_i32 : i32
    %31 = vector.broadcast %30 : i32 to vector<1x128xi32>
    %32 = arith.remsi %28, %31 : vector<1x128xi32>
    %c0_i32_17 = arith.constant 0 : i32
    %33 = vector.broadcast %c0_i32_17 : i32 to vector<1x128xi32>
    %34 = arith.cmpi ne, %32, %33 : vector<1x128xi32>
    %c0_i32_18 = arith.constant 0 : i32
    %35 = vector.broadcast %c0_i32_18 : i32 to vector<1x128xi32>
    %36 = arith.cmpi slt, %32, %35 : vector<1x128xi32>
    %c0_i32_19 = arith.constant 0 : i32
    %37 = arith.cmpi slt, %30, %c0_i32_19 : i32
    %38 = vector.broadcast %37 : i1 to vector<1x128xi1>
    %39 = vector.broadcast %38 : vector<1x128xi1> to vector<1x128xi1>
    %40 = arith.xori %36, %39 : vector<1x128xi1>
    %41 = arith.andi %40, %34 : vector<1x128xi1>
    %42 = vector.broadcast %30 : i32 to vector<1x128xi32>
    %43 = arith.addi %32, %42 : vector<1x128xi32>
    %44 = arith.select %41, %43, %32 : vector<1x128xi1>, vector<1x128xi32>
    %c32_i32 = arith.constant 32 : i32
    %45 = vector.broadcast %c32_i32 : i32 to vector<1x128xi32>
    %46 = arith.cmpi slt, %28, %45 : vector<1x128xi32>
    %c-1_i32 = arith.constant -1 : i32
    %47 = vector.broadcast %c-1_i32 : i32 to vector<1x128xi32>
    %48 = arith.addi %44, %47 : vector<1x128xi32>
    %c0_i32_20 = arith.constant 0 : i32
    %49 = vector.broadcast %c0_i32_20 : i32 to vector<1x128xi32>
    %50 = arith.cmpi sge, %48, %49 : vector<1x128xi32>
    %51 = arith.andi %46, %50 : vector<1x128xi1>
    %c-1_i32_21 = arith.constant -1 : i32
    %52 = vector.broadcast %c-1_i32_21 : i32 to vector<1x128xi32>
    %53 = arith.addi %44, %52 : vector<1x128xi32>
    %c16_i32_22 = arith.constant 16 : i32
    %54 = vector.broadcast %c16_i32_22 : i32 to vector<1x128xi32>
    %55 = arith.cmpi slt, %53, %54 : vector<1x128xi32>
    %56 = arith.andi %51, %55 : vector<1x128xi1>
    %c32_i32_23 = arith.constant 32 : i32
    %57 = vector.broadcast %c32_i32_23 : i32 to vector<1x128xi32>
    %58 = arith.cmpi slt, %28, %57 : vector<1x128xi32>
    %c0_i32_24 = arith.constant 0 : i32
    %59 = vector.broadcast %c0_i32_24 : i32 to vector<1x128xi32>
    %60 = arith.addi %44, %59 : vector<1x128xi32>
    %c0_i32_25 = arith.constant 0 : i32
    %61 = vector.broadcast %c0_i32_25 : i32 to vector<1x128xi32>
    %62 = arith.cmpi sge, %60, %61 : vector<1x128xi32>
    %63 = arith.andi %58, %62 : vector<1x128xi1>
    %c0_i32_26 = arith.constant 0 : i32
    %64 = vector.broadcast %c0_i32_26 : i32 to vector<1x128xi32>
    %65 = arith.addi %44, %64 : vector<1x128xi32>
    %c16_i32_27 = arith.constant 16 : i32
    %66 = vector.broadcast %c16_i32_27 : i32 to vector<1x128xi32>
    %67 = arith.cmpi slt, %65, %66 : vector<1x128xi32>
    %68 = arith.andi %63, %67 : vector<1x128xi1>
    %c32_i32_28 = arith.constant 32 : i32
    %69 = vector.broadcast %c32_i32_28 : i32 to vector<1x128xi32>
    %70 = arith.cmpi slt, %28, %69 : vector<1x128xi32>
    %c1_i32_29 = arith.constant 1 : i32
    %71 = vector.broadcast %c1_i32_29 : i32 to vector<1x128xi32>
    %72 = arith.addi %44, %71 : vector<1x128xi32>
    %c0_i32_30 = arith.constant 0 : i32
    %73 = vector.broadcast %c0_i32_30 : i32 to vector<1x128xi32>
    %74 = arith.cmpi sge, %72, %73 : vector<1x128xi32>
    %75 = arith.andi %70, %74 : vector<1x128xi1>
    %c1_i32_31 = arith.constant 1 : i32
    %76 = vector.broadcast %c1_i32_31 : i32 to vector<1x128xi32>
    %77 = arith.addi %44, %76 : vector<1x128xi32>
    %c16_i32_32 = arith.constant 16 : i32
    %78 = vector.broadcast %c16_i32_32 : i32 to vector<1x128xi32>
    %79 = arith.cmpi slt, %77, %78 : vector<1x128xi32>
    %80 = arith.andi %75, %79 : vector<1x128xi1>
    %c0_33 = arith.constant 0 : index
    %c0_34 = arith.constant 0 : index
    %81 = vector.load %arg5[%c0_33, %c0_34] : memref<16x128xf32, #tpu.memory_space<vmem>>, vector<16x128xf32>
    %c1_i32_35 = arith.constant 1 : i32
    %82 = tpu.dynamic_rotate %81 by %c1_i32_35 dim 1 : vector<16x128xf32>, i32 -> vector<16x128xf32>
    %cst_36 = arith.constant 0.000000e+00 : f32
    %83 = vector.shape_cast %56 : vector<1x128xi1> to vector<1x128xi1>
    %84 = vector.broadcast %83 : vector<1x128xi1> to vector<16x128xi1>
    %85 = vector.broadcast %cst_36 : f32 to vector<16x128xf32>
    %86 = arith.select %84, %82, %85 : vector<16x128xi1>, vector<16x128xf32>
    %c0_37 = arith.constant 0 : index
    %c0_38 = arith.constant 0 : index
    %87 = vector.load %arg6[%c0_37, %c0_38] : memref<48x128xf32, #tpu.memory_space<vmem>>, vector<16x128xf32>
    tpu.vector_store %arg6[%c0_37, %c0_38], %86 {strides = array<i32>} : memref<48x128xf32, #tpu.memory_space<vmem>>, vector<16x128xf32>,
    %cst_39 = arith.constant 0.000000e+00 : f32
    %88 = vector.shape_cast %68 : vector<1x128xi1> to vector<1x128xi1>
    %89 = vector.broadcast %88 : vector<1x128xi1> to vector<16x128xi1>
    %90 = vector.broadcast %cst_39 : f32 to vector<16x128xf32>
    %91 = arith.select %89, %81, %90 : vector<16x128xi1>, vector<16x128xf32>
    %c16 = arith.constant 16 : index
    %c0_40 = arith.constant 0 : index
    %92 = vector.load %arg6[%c16, %c0_40] : memref<48x128xf32, #tpu.memory_space<vmem>>, vector<16x128xf32>
    tpu.vector_store %arg6[%c16, %c0_40], %91 {strides = array<i32>} : memref<48x128xf32, #tpu.memory_space<vmem>>, vector<16x128xf32>,
    %c127_i32 = arith.constant 127 : i32
    %93 = tpu.dynamic_rotate %81 by %c127_i32 dim 1 : vector<16x128xf32>, i32 -> vector<16x128xf32>
    %cst_41 = arith.constant 0.000000e+00 : f32
    %94 = vector.shape_cast %80 : vector<1x128xi1> to vector<1x128xi1>
    %95 = vector.broadcast %94 : vector<1x128xi1> to vector<16x128xi1>
    %96 = vector.broadcast %cst_41 : f32 to vector<16x128xf32>
    %97 = arith.select %95, %93, %96 : vector<16x128xi1>, vector<16x128xf32>
    %c32 = arith.constant 32 : index
    %c0_42 = arith.constant 0 : index
    %98 = vector.load %arg6[%c32, %c0_42] : memref<48x128xf32, #tpu.memory_space<vmem>>, vector<16x128xf32>
    tpu.vector_store %arg6[%c32, %c0_42], %97 {strides = array<i32>} : memref<48x128xf32, #tpu.memory_space<vmem>>, vector<16x128xf32>,
    %c0_43 = arith.constant 0 : index
    %c0_44 = arith.constant 0 : index
    %c0_45 = arith.constant 0 : index
    %99 = vector.load %arg3[%c0_43, %c0_44, %c0_45] : memref<3x4x48xf32, #tpu.memory_space<vmem>>, vector<1x4x48xf32>
    %100 = vector.shape_cast %99 : vector<1x4x48xf32> to vector<4x48xf32>
    %c0_46 = arith.constant 0 : index
    %c0_47 = arith.constant 0 : index
    %101 = vector.load %arg6[%c0_46, %c0_47] : memref<48x128xf32, #tpu.memory_space<vmem>>, vector<48x128xf32>
    %cst_48 = arith.constant dense<0.000000e+00> : vector<4x128xf32>
    %102 = tpu.matmul %100, %101, %cst_48 {dimension_numbers = #tpu.dot_dimension_numbers<[1], [0], [0], [1], [0, 0, 1, 1], [], []>} : vector<4x48xf32>, vector<48x128xf32>, vector<4x128xf32> -> vector<4x128xf32>
    %c0_49 = arith.constant 0 : index
    %c0_50 = arith.constant 0 : index
    %c0_51 = arith.constant 0 : index
    %103 = vector.load %arg4[%c0_49, %c0_50, %c0_51] : memref<3x4x1xf32, #tpu.memory_space<vmem>>, vector<1x4x1xf32>
    %104 = vector.shape_cast %103 : vector<1x4x1xf32> to vector<4x1xf32>
    %105 = vector.broadcast %104 : vector<4x1xf32> to vector<4x128xf32>
    %106 = arith.addf %102, %105 : vector<4x128xf32>
    %cst_52 = arith.constant 0.000000e+00 : f32
    %107 = vector.broadcast %cst_52 : f32 to vector<4x128xf32>
    %108 = arith.maximumf %106, %107 : vector<4x128xf32>
    %c4 = arith.constant 4 : index
    %c0_53 = arith.constant 0 : index
    %109 = vector.load %arg5[%c4, %c0_53] : memref<16x128xf32, #tpu.memory_space<vmem>>, vector<4x128xf32>
    tpu.vector_store %arg5[%c4, %c0_53], %108 {strides = array<i32>} : memref<16x128xf32, #tpu.memory_space<vmem>>, vector<4x128xf32>,
    %c0_54 = arith.constant 0 : index
    %c0_55 = arith.constant 0 : index
    %110 = vector.load %arg5[%c0_54, %c0_55] : memref<16x128xf32, #tpu.memory_space<vmem>>, vector<4x128xf32>
    %cst_56 = arith.constant 0.000000e+00 : f32
    %111 = vector.broadcast %cst_56 : f32 to vector<4x128xf32>
    %112 = arith.maximumf %110, %111 : vector<4x128xf32>
    %c0_57 = arith.constant 0 : index
    %c0_58 = arith.constant 0 : index
    %113 = vector.load %arg5[%c0_57, %c0_58] : memref<16x128xf32, #tpu.memory_space<vmem>>, vector<4x128xf32>
    tpu.vector_store %arg5[%c0_57, %c0_58], %112 {strides = array<i32>} : memref<16x128xf32, #tpu.memory_space<vmem>>, vector<4x128xf32>,
    %c0_59 = arith.constant 0 : index
    %c0_60 = arith.constant 0 : index
    %114 = vector.load %arg5[%c0_59, %c0_60] : memref<16x128xf32, #tpu.memory_space<vmem>>, vector<16x128xf32>
    %c1_i32_61 = arith.constant 1 : i32
    %115 = tpu.dynamic_rotate %114 by %c1_i32_61 dim 1 : vector<16x128xf32>, i32 -> vector<16x128xf32>
    %cst_62 = arith.constant 0.000000e+00 : f32
    %116 = vector.shape_cast %56 : vector<1x128xi1> to vector<1x128xi1>
    %117 = vector.broadcast %116 : vector<1x128xi1> to vector<16x128xi1>
    %118 = vector.broadcast %cst_62 : f32 to vector<16x128xf32>
    %119 = arith.select %117, %115, %118 : vector<16x128xi1>, vector<16x128xf32>
    %c0_63 = arith.constant 0 : index
    %c0_64 = arith.constant 0 : index
    %120 = vector.load %arg6[%c0_63, %c0_64] : memref<48x128xf32, #tpu.memory_space<vmem>>, vector<16x128xf32>
    tpu.vector_store %arg6[%c0_63, %c0_64], %119 {strides = array<i32>} : memref<48x128xf32, #tpu.memory_space<vmem>>, vector<16x128xf32>,
    %cst_65 = arith.constant 0.000000e+00 : f32
    %121 = vector.shape_cast %68 : vector<1x128xi1> to vector<1x128xi1>
    %122 = vector.broadcast %121 : vector<1x128xi1> to vector<16x128xi1>
    %123 = vector.broadcast %cst_65 : f32 to vector<16x128xf32>
    %124 = arith.select %122, %114, %123 : vector<16x128xi1>, vector<16x128xf32>
    %c16_66 = arith.constant 16 : index
    %c0_67 = arith.constant 0 : index
    %125 = vector.load %arg6[%c16_66, %c0_67] : memref<48x128xf32, #tpu.memory_space<vmem>>, vector<16x128xf32>
    tpu.vector_store %arg6[%c16_66, %c0_67], %124 {strides = array<i32>} : memref<48x128xf32, #tpu.memory_space<vmem>>, vector<16x128xf32>,
    %c127_i32_68 = arith.constant 127 : i32
    %126 = tpu.dynamic_rotate %114 by %c127_i32_68 dim 1 : vector<16x128xf32>, i32 -> vector<16x128xf32>
    %cst_69 = arith.constant 0.000000e+00 : f32
    %127 = vector.shape_cast %80 : vector<1x128xi1> to vector<1x128xi1>
    %128 = vector.broadcast %127 : vector<1x128xi1> to vector<16x128xi1>
    %129 = vector.broadcast %cst_69 : f32 to vector<16x128xf32>
    %130 = arith.select %128, %126, %129 : vector<16x128xi1>, vector<16x128xf32>
    %c32_70 = arith.constant 32 : index
    %c0_71 = arith.constant 0 : index
    %131 = vector.load %arg6[%c32_70, %c0_71] : memref<48x128xf32, #tpu.memory_space<vmem>>, vector<16x128xf32>
    tpu.vector_store %arg6[%c32_70, %c0_71], %130 {strides = array<i32>} : memref<48x128xf32, #tpu.memory_space<vmem>>, vector<16x128xf32>,
    %c1 = arith.constant 1 : index
    %c0_72 = arith.constant 0 : index
    %c0_73 = arith.constant 0 : index
    %132 = vector.load %arg3[%c1, %c0_72, %c0_73] : memref<3x4x48xf32, #tpu.memory_space<vmem>>, vector<1x4x48xf32>
    %133 = vector.shape_cast %132 : vector<1x4x48xf32> to vector<4x48xf32>
    %c0_74 = arith.constant 0 : index
    %c0_75 = arith.constant 0 : index
    %134 = vector.load %arg6[%c0_74, %c0_75] : memref<48x128xf32, #tpu.memory_space<vmem>>, vector<48x128xf32>
    %cst_76 = arith.constant dense<0.000000e+00> : vector<4x128xf32>
    %135 = tpu.matmul %133, %134, %cst_76 {dimension_numbers = #tpu.dot_dimension_numbers<[1], [0], [0], [1], [0, 0, 1, 1], [], []>} : vector<4x48xf32>, vector<48x128xf32>, vector<4x128xf32> -> vector<4x128xf32>
    %c1_77 = arith.constant 1 : index
    %c0_78 = arith.constant 0 : index
    %c0_79 = arith.constant 0 : index
    %136 = vector.load %arg4[%c1_77, %c0_78, %c0_79] : memref<3x4x1xf32, #tpu.memory_space<vmem>>, vector<1x4x1xf32>
    %137 = vector.shape_cast %136 : vector<1x4x1xf32> to vector<4x1xf32>
    %138 = vector.broadcast %137 : vector<4x1xf32> to vector<4x128xf32>
    %139 = arith.addf %135, %138 : vector<4x128xf32>
    %cst_80 = arith.constant 0.000000e+00 : f32
    %140 = vector.broadcast %cst_80 : f32 to vector<4x128xf32>
    %141 = arith.maximumf %139, %140 : vector<4x128xf32>
    %c8 = arith.constant 8 : index
    %c0_81 = arith.constant 0 : index
    %142 = vector.load %arg5[%c8, %c0_81] : memref<16x128xf32, #tpu.memory_space<vmem>>, vector<4x128xf32>
    tpu.vector_store %arg5[%c8, %c0_81], %141 {strides = array<i32>} : memref<16x128xf32, #tpu.memory_space<vmem>>, vector<4x128xf32>,
    %c0_82 = arith.constant 0 : index
    %c0_83 = arith.constant 0 : index
    %143 = vector.load %arg5[%c0_82, %c0_83] : memref<16x128xf32, #tpu.memory_space<vmem>>, vector<16x128xf32>
    %c1_i32_84 = arith.constant 1 : i32
    %144 = tpu.dynamic_rotate %143 by %c1_i32_84 dim 1 : vector<16x128xf32>, i32 -> vector<16x128xf32>
    %cst_85 = arith.constant 0.000000e+00 : f32
    %145 = vector.shape_cast %56 : vector<1x128xi1> to vector<1x128xi1>
    %146 = vector.broadcast %145 : vector<1x128xi1> to vector<16x128xi1>
    %147 = vector.broadcast %cst_85 : f32 to vector<16x128xf32>
    %148 = arith.select %146, %144, %147 : vector<16x128xi1>, vector<16x128xf32>
    %c0_86 = arith.constant 0 : index
    %c0_87 = arith.constant 0 : index
    %149 = vector.load %arg6[%c0_86, %c0_87] : memref<48x128xf32, #tpu.memory_space<vmem>>, vector<16x128xf32>
    tpu.vector_store %arg6[%c0_86, %c0_87], %148 {strides = array<i32>} : memref<48x128xf32, #tpu.memory_space<vmem>>, vector<16x128xf32>,
    %cst_88 = arith.constant 0.000000e+00 : f32
    %150 = vector.shape_cast %68 : vector<1x128xi1> to vector<1x128xi1>
    %151 = vector.broadcast %150 : vector<1x128xi1> to vector<16x128xi1>
    %152 = vector.broadcast %cst_88 : f32 to vector<16x128xf32>
    %153 = arith.select %151, %143, %152 : vector<16x128xi1>, vector<16x128xf32>
    %c16_89 = arith.constant 16 : index
    %c0_90 = arith.constant 0 : index
    %154 = vector.load %arg6[%c16_89, %c0_90] : memref<48x128xf32, #tpu.memory_space<vmem>>, vector<16x128xf32>
    tpu.vector_store %arg6[%c16_89, %c0_90], %153 {strides = array<i32>} : memref<48x128xf32, #tpu.memory_space<vmem>>, vector<16x128xf32>,
    %c127_i32_91 = arith.constant 127 : i32
    %155 = tpu.dynamic_rotate %143 by %c127_i32_91 dim 1 : vector<16x128xf32>, i32 -> vector<16x128xf32>
    %cst_92 = arith.constant 0.000000e+00 : f32
    %156 = vector.shape_cast %80 : vector<1x128xi1> to vector<1x128xi1>
    %157 = vector.broadcast %156 : vector<1x128xi1> to vector<16x128xi1>
    %158 = vector.broadcast %cst_92 : f32 to vector<16x128xf32>
    %159 = arith.select %157, %155, %158 : vector<16x128xi1>, vector<16x128xf32>
    %c32_93 = arith.constant 32 : index
    %c0_94 = arith.constant 0 : index
    %160 = vector.load %arg6[%c32_93, %c0_94] : memref<48x128xf32, #tpu.memory_space<vmem>>, vector<16x128xf32>
    tpu.vector_store %arg6[%c32_93, %c0_94], %159 {strides = array<i32>} : memref<48x128xf32, #tpu.memory_space<vmem>>, vector<16x128xf32>,
    %c2 = arith.constant 2 : index
    %c0_95 = arith.constant 0 : index
    %c0_96 = arith.constant 0 : index
    %161 = vector.load %arg3[%c2, %c0_95, %c0_96] : memref<3x4x48xf32, #tpu.memory_space<vmem>>, vector<1x4x48xf32>
    %162 = vector.shape_cast %161 : vector<1x4x48xf32> to vector<4x48xf32>
    %c0_97 = arith.constant 0 : index
    %c0_98 = arith.constant 0 : index
    %163 = vector.load %arg6[%c0_97, %c0_98] : memref<48x128xf32, #tpu.memory_space<vmem>>, vector<48x128xf32>
    %cst_99 = arith.constant dense<0.000000e+00> : vector<4x128xf32>
    %164 = tpu.matmul %162, %163, %cst_99 {dimension_numbers = #tpu.dot_dimension_numbers<[1], [0], [0], [1], [0, 0, 1, 1], [], []>} : vector<4x48xf32>, vector<48x128xf32>, vector<4x128xf32> -> vector<4x128xf32>
    %c2_100 = arith.constant 2 : index
    %c0_101 = arith.constant 0 : index
    %c0_102 = arith.constant 0 : index
    %165 = vector.load %arg4[%c2_100, %c0_101, %c0_102] : memref<3x4x1xf32, #tpu.memory_space<vmem>>, vector<1x4x1xf32>
    %166 = vector.shape_cast %165 : vector<1x4x1xf32> to vector<4x1xf32>
    %167 = vector.broadcast %166 : vector<4x1xf32> to vector<4x128xf32>
    %168 = arith.addf %164, %167 : vector<4x128xf32>
    %cst_103 = arith.constant 0.000000e+00 : f32
    %169 = vector.broadcast %cst_103 : f32 to vector<4x128xf32>
    %170 = arith.maximumf %168, %169 : vector<4x128xf32>
    %c12 = arith.constant 12 : index
    %c0_104 = arith.constant 0 : index
    %171 = vector.load %arg5[%c12, %c0_104] : memref<16x128xf32, #tpu.memory_space<vmem>>, vector<4x128xf32>
    tpu.vector_store %arg5[%c12, %c0_104], %170 {strides = array<i32>} : memref<16x128xf32, #tpu.memory_space<vmem>>, vector<4x128xf32>,
    return
  }
}

</mosaic_0001>

<bundles_post_ra>
// kernel: tpu_custom_call.1
= control target key start
LH: loop header
LB: loop body
LE: loop exit
PB: predicated region body
PF: predicated region fallthrough
CT: control target
= control target key end

     0   :  { %vm30_vm0 = vcmask 257024   ;;  %s517_s0 = inlined_call_operand.vmem [shape: f32[4,32], index: 0, kind: input, shape index: {}]   ;;  %s518_s1 = inlined_call_operand.vmem [shape: f32[4,1], index: 1, kind: input, shape index: {}]   ;;  %s519_s2 = inlined_call_operand.vmem [shape: f32[4,1], index: 2, kind: input, shape index: {}]   ;;  %s520_s3 = inlined_call_operand.vmem [shape: f32[3,4,48], index: 3, kind: input, shape index: {}]   ;;  %s521_s4 = inlined_call_operand.vmem [shape: f32[3,4,1], index: 4, kind: input, shape index: {}]   ;;  %s522_s5 = inlined_call_operand.hbm [shape: f32[16,128], index: 5, kind: output, shape index: {}]  }
   0x1   :  { %v29_v0 = vld [vmem:[%s517_s0] sm:$0xf] }
   0x2   :  { %10 = vsyncpa [#allocation4], 0  ;;  %v31_v1 = vsel %vm30_vm0, %v29_v0, 0.0  ;;  %v52_v2 = vld [vmem:[%s518_s1] sm:$0xf]  ;;  %v372_v3 = vmov 0   ;;  %v68_v29 = vlaneseq }
   0x3   :  { %32 = vadd.xlane.f32.xlu0 %v31_v1  ;;  %341 = vset.pattern.permute.xlu1 %v372_v3  ;;  %v60_v4 = vld [vmem:[%s519_s2] sm:$0xf]  ;;  %v373_v10 = vmov 0.0   ;;  %s374_s0 = smov 127   ;;  %s375_s1 = smov 1   ;;  %vm138_vm9 = vcmask 392192  }
   0x4   :  { %342 = vset.pattern.permute.xlu2 %v372_v3  ;;  %56 = vperm.xlu1 %341, %v52_v2   ;;  %21 = vst [vmem:[#allocation3] sm:$0xff] %v373_v10  ;;  %v433_v30 = vand.u32 127, %v68_v29  ;;  %v132_v35 = vld [vmem:[%s521_s4] sm:$0xf]  ;;  %v311_v48 = vld [vmem:[%s521_s4 + $0x4] sm:$0xf] }
   0x5   :  { %343 = vset.pattern.permute.xlu0 %v372_v3  ;;  %117 = vrot.lane.b32.xlu2 %v373_v10, %s374_s0  ;;  %22 = vst [vmem:[#allocation3 + $0x8] sm:$0xff] %v373_v10  ;;  %v125_v40 = vld [vmem:[%s520_s3] sm:$0xf]  ;;  %v314_v49 = vld [vmem:[%s521_s4 + $0x8] sm:$0xf]  ;;  %s376_s9 = smov [#allocation3]  }
   0x6   :  { %v74_v31 = vand.u32 15, %v433_v30  ;;  %vm82_vm4 = vcmp.lt.s32.totalorder %v433_v30, 32  ;;  %v310_v52 = vld [vmem:[%s520_s3 + $0x4] sm:$0xf]  ;;  %v313_v62 = vld [vmem:[%s520_s3 + $0x8] sm:$0xf] }
   0x7   :  { %s295_s10 = sshll.u32 %s376_s9, 4  ;;  %s297_s13 = sshll.u32 %s522_s5, 4  ;;  %s296_s10 = int_to_ptr.vmem [resolvable:$true] %s295_s10  ;;  %s298_s13 = int_to_ptr.hbm [resolvable:$true] %s297_s13 }
   0x8   :  { %v92_v32 = vadd.s32 1, %v74_v31  ;;  %v83_v36 = vadd.s32 4294967295, %v74_v31  ;;  %s377_s3 = smov 128   ;;  %s378_s14 = smov 8  }
   0xa   :  { %vm95_vm5 = vcmp.lt.s32.totalorder %v92_v32, 16  ;;  %vm84_vm7 = vcmp.ge.s32.totalorder %v83_v36, 0 }
   0xb   :  { %vm439_vm6 = vmand %vm82_vm4, %vm95_vm5 }
   0xc   :  { %63 = vperm.xlu1 %341, %v60_v4   ;;  %vm455_vm8 = vmand %vm82_vm4, %vm84_vm7 }
  0x5f   :  { %v118_v34 = vpop.permute.xlu2 %117 }
  0x60   :  { %316 = vmatpush.msk.msra.mxu0 %vm439_vm6, %v118_v34 }
  0x76   :  { %v33_v5 = vpop.xlane.xlu0 %32  ;;  %v57_v18 = vpop.permute.xlu1 %56 }
  0x77   :  { %v34_v6 = vmul.f32 0.03125, %v33_v5 }
  0x79   :  { %v35_v7 = vsub.f32 %v29_v0, %v34_v6 }
  0x7b   :  { %v36_v8 = vmul.f32 %v35_v7, %v35_v7 }
  0x7d   :  { %v37_v9 = vsel %vm30_vm0, %v36_v8, 0.0 }
  0x7e   :  { %38 = vadd.xlane.f32.xlu0 %v37_v9  ;;  %v64_v24 = vpop.permute.xlu1 %63 }
  0x92   :  { %101 = vrot.lane.b32.xlu0 %v373_v10, %s375_s1 }
  0x9a   :  { %201 = vperm.xlu0 %343, %v311_v48  }
  0xa2   :  { %263 = vperm.xlu0 %343, %v314_v49  }
  0xf1   :  { %v39_v11 = vpop.xlane.xlu0 %38 }
  0xf2   :  { %v40_v12 = vmul.f32 0.03125, %v39_v11 }
  0xf4   :  { %v41_v13 = vadd.f32 1e-05, %v40_v12 }
  0xf6   :  { %344 = vrsqrt.f32 %v41_v13  ;;  %vm48_vm2 = vweird.f32 %v41_v13 }
  0xfc   :  { %v345_v14 = vpop.eup %344 }
  0xfd   :  { %v43_v15 = vmul.f32 %v345_v14, %v41_v13  ;;  %vm49_vm1 = vweird.f32 %v345_v14 }
  0xfe   :  { %vm50_vm3 = vmor %vm48_vm2, %vm49_vm1 }
  0xff   :  { %v44_v16 = vmul.f32 %v345_v14, %v43_v15 }
 0x101   :  { %v45_v17 = vmul.f32 0.5, %v44_v16 }
 0x103   :  { %v46_v19 = vsub.f32 1.5, %v45_v17 }
 0x104   :  { %v102_v38 = vpop.permute.xlu0 %101 }
 0x105   :  { %v47_v20 = vmul.f32 %v345_v14, %v46_v19 }
 0x107   :  { %v51_v21 = vsel %vm50_vm3, %v345_v14, %v47_v20 }
 0x108   :  { %v53_v22 = vmul.f32 %v51_v21, %v35_v7 }
 0x10a   :  { %v59_v23 = vmul.f32 %v57_v18, %v53_v22 }
 0x10c   :  { %v66_v25 = vadd.f32 %v64_v24, %v59_v23  ;;  %v202_v54 = vpop.permute.xlu0 %201 }
 0x10e   :  { %67 = vst.msk [vmem:[#allocation3] sm:$0xf] %vm30_vm0, %v66_v25 }
 0x114   :  { %v264_v0 = vpop.permute.xlu0 %263 }
 0x115   :  { %v97_v26 = vld [vmem:[#allocation3] sm:$0xff] }
 0x116   :  { %v164_v27 = vld [vmem:[#allocation3] sm:$0xf]  ;;  %99 = vrot.lane.b32.xlu1 %v97_v26, %s375_s1  ;;  %115 = vrot.lane.b32.xlu2 %v97_v26, %s374_s0 }
 0x117   :  { %v165_v28 = vmax.f32 %v164_v27, 0.0 }
 0x119   :  { %166 = vst [vmem:[#allocation3] sm:$0xf] %v165_v28 }
 0x11e   :  { %183 = vrot.lane.b32.xlu1 %v373_v10, %s374_s0  ;;  %135 = vperm.xlu2 %342, %v132_v35  }
 0x126   :  { %171 = vrot.lane.b32.xlu1 %v373_v10, %s375_s1 }
 0x170   :  { %v116_v37 = vpop.permute.xlu2 %115 }
 0x171   :  { %317 = vmatpush.msk.msra.mxu0 %vm439_vm6, %v116_v37 }
 0x173   :  { %318 = vmatpush.msk.msra.mxu0 %vm82_vm4, %v373_v10 }
 0x175   :  { %319 = vmatpush.msk.msra.mxu0 %vm82_vm4, %v97_v26 }
 0x177   :  { %320 = vmatpush.msk.msra.mxu0 %vm455_vm8, %v102_v38 }
 0x178   :  { %v136_v42 = vpop.permute.xlu2 %135 }
 0x188   :  { %v100_v41 = vpop.permute.xlu1 %99 }
 0x189   :  { %321 = vmatpush.msk.msra.mxu0 %vm455_vm8, %v100_v41 }
 0x18a   :  { %309 = vmatmul.msk.f32.vlgmr.msra.gmra.mxu0 %vm138_vm9, %v125_v40 }
 0x190   :  { %v184_v46 = vpop.permute.xlu1 %183 }
 0x191   :  { %322 = vmatpush.msk.msra.mxu1 %vm439_vm6, %v184_v46 }
 0x198   :  { %v172_v51 = vpop.permute.xlu1 %171 }
 0x207   :  { %v159_v43 = vpop.f32.mrf.mxu0 }
 0x208   :  { %v160_v44 = vadd.f32 %v159_v43, %v136_v42 }
 0x20a   :  { %v162_v45 = vmax.f32 %v160_v44, 0.0 }
 0x20c   :  { %163 = vst [vmem:[#allocation3 + $0x4] sm:$0xf] %v162_v45 }
 0x213   :  { %v167_v47 = vld [vmem:[#allocation3] sm:$0xff] }
 0x214   :  { %181 = vrot.lane.b32.xlu2 %v167_v47, %s374_s0 }
 0x21c   :  { %169 = vrot.lane.b32.xlu2 %v167_v47, %s375_s1 }
 0x224   :  { %243 = vrot.lane.b32.xlu2 %v167_v47, %s374_s0 }
 0x22c   :  { %231 = vrot.lane.b32.xlu2 %v167_v47, %s375_s1 }
 0x26e   :  { %v182_v50 = vpop.permute.xlu2 %181 }
 0x26f   :  { %323 = vmatpush.msk.msra.mxu1 %vm439_vm6, %v182_v50 }
 0x271   :  { %324 = vmatpush.msk.msra.mxu1 %vm82_vm4, %v373_v10 }
 0x273   :  { %325 = vmatpush.msk.msra.mxu1 %vm82_vm4, %v167_v47 }
 0x275   :  { %326 = vmatpush.msk.msra.mxu1 %vm455_vm8, %v172_v51 }
 0x276   :  { %v170_v53 = vpop.permute.xlu2 %169 }
 0x277   :  { %327 = vmatpush.msk.msra.mxu1 %vm455_vm8, %v170_v53 }
 0x278   :  { %312 = vmatmul.msk.f32.vlgmr.msra.gmra.mxu1 %vm138_vm9, %v310_v52 }
 0x27e   :  { %v244_v59 = vpop.permute.xlu2 %243 }
 0x286   :  { %v232_v63 = vpop.permute.xlu2 %231 }
 0x2f5   :  { %v224_v55 = vpop.f32.mrf.mxu1 }
 0x2f6   :  { %v225_v56 = vadd.f32 %v224_v55, %v202_v54 }
 0x2f8   :  { %v227_v57 = vmax.f32 %v225_v56, 0.0 }
 0x2fa   :  { %228 = vst [vmem:[#allocation3 + $0x8] sm:$0xf] %v227_v57 }
 0x301   :  { %v230_v58 = vld [vmem:[#allocation3 + $0x8] sm:$0xff] }
 0x302   :  { %245 = vrot.lane.b32.xlu1 %v230_v58, %s374_s0 }
 0x30a   :  { %233 = vrot.lane.b32.xlu1 %v230_v58, %s375_s1 }
 0x374   :  { %v246_v60 = vpop.permute.xlu1 %245 }
 0x375   :  { %328 = vmatpush.msk.msra.mxu2 %vm439_vm6, %v246_v60 }
 0x377   :  { %329 = vmatpush.msk.msra.mxu2 %vm439_vm6, %v244_v59 }
 0x379   :  { %330 = vmatpush.msk.msra.mxu2 %vm82_vm4, %v230_v58 }
 0x37b   :  { %331 = vmatpush.msk.msra.mxu2 %vm82_vm4, %v167_v47 }
 0x37c   :  { %v234_v61 = vpop.permute.xlu1 %233 }
 0x37d   :  { %332 = vmatpush.msk.msra.mxu2 %vm455_vm8, %v234_v61 }
 0x37f   :  { %333 = vmatpush.msk.msra.mxu2 %vm455_vm8, %v232_v63 }
 0x380   :  { %315 = vmatmul.msk.f32.vlgmr.msra.gmra.mxu2 %vm138_vm9, %v313_v62 }
 0x403   :  { %v286_v1 = vpop.f32.mrf.mxu2 }
 0x404   :  { %v287_v2 = vadd.f32 %v286_v1, %v264_v0 }
 0x406   :  { %v289_v3 = vmax.f32 %v287_v2, 0.0 }
 0x408   :  { %290 = vst [vmem:[#allocation3 + $0xc] sm:$0xf] %v289_v3 }
 0x409   :  { %303 = dma.vmem_to_hbm [thread:$0]  %s296_s10, 256, %s298_s13, [#allocation4], %s377_s3, %s377_s3, %s378_s14  }
 0x40a   :  { %370 = dma.done.wait [#allocation4], 256  }
 0x40b   :  { %371 = vsyncadd [#allocation4], 4294967040 }
 0x40c   :  { %308 = vsyncpa [#allocation4], 1 }

</bundles_post_ra>
